<compile_context>
chip_gen: v6e
topology: v6e:2x2x1
jax: 0.10.0
libtpu: 0.0.40
codegen_flags: <defaults>
</compile_context>

<pallas_src>
import functools

import jax
import jax.numpy as jnp
from jax.experimental import pallas as pl
from jax.experimental.pallas import tpu as pltpu

NUM_NEG = 3           # args.contextpred_neg_samples in the reference
NUM_CLASSES = 119     # molecule_atom_masking_model output dim
NEG_INF_BIAS = -1e30  # bias for padded class columns (exp() underflows to 0)
_VMEM_LIMIT = 32 * 1024 * 1024  # explicit scoped-VMEM budget (safe on v5e/v6e/v7x)


def _round_up(x, m):
    return ((x + m - 1) // m) * m


def _softplus(z):
    # numerically stable log(1 + exp(z))
    return jnp.maximum(z, 0.0) + jnp.log(1.0 + jnp.exp(-jnp.abs(z)))


# ---------------------------------------------------------------------------
# CP (context prediction) kernel: row-tiled, band-only dot products.
#   pred_pos[i] = <sub_i, ctx_i>,  pred_neg[i,k] = <sub_i, ctx_{(i+k) % n}>, k=1..NUM_NEG
# The cyclic index is realised per tile with an 8-row halo of the next tile plus
# wrap rows placed in ctx's row padding by the wrapper.  Row sums go through the MXU.
# ---------------------------------------------------------------------------
def cp_kernel(sub_ref, ctx_ref, halo_ref, loss_ref, acc_ref, *, n, tn):
    t = pl.program_id(0)

    @pl.when(t == 0)
    def _():
        acc_ref[...] = jnp.zeros_like(acc_ref)

    sub = sub_ref[...].astype(jnp.float32)                    # (tn, H)
    ctx = ctx_ref[...].astype(jnp.float32)                    # (tn, H)
    halo = halo_ref[...].astype(jnp.float32)                  # (8, H) first rows of next tile
    h = sub.shape[1]

    row = jax.lax.broadcasted_iota(jnp.int32, (tn, 1), 0)
    valid = ((t * tn + row) < n).astype(jnp.float32)          # mask padded rows

    # halo-extended context: cat[j] = ctx tile row j for j < tn, next-tile row j-tn otherwise
    cat = jnp.concatenate([ctx, halo], axis=0)                # (tn + 8, H)

    prods = [sub * ctx]                                       # positive pairs
    for k in range(1, NUM_NEG + 1):
        # ctx_k[j] = ctx[(global_row + k) mod n]  (wrap rows live in ctx's padding / halo)
        ctx_k = pltpu.roll(cat, shift=tn + 8 - k, axis=0)[:tn, :]
        prods.append(sub * ctx_k)
    p = jnp.concatenate(prods, axis=0)                        # ((1+NUM_NEG)*tn, H)

    # Row-sum on the MXU (ones column) instead of 4 cross-lane XLU reductions.
    ones_col = jnp.ones((h, 128), jnp.float32)
    pred = jnp.dot(p, ones_col, preferred_element_type=jnp.float32)[:, 0:1]

    rows4 = jax.lax.broadcasted_iota(jnp.int32, ((1 + NUM_NEG) * tn, 1), 0)
    sign = jnp.where(rows4 < tn, -1.0, 1.0)                   # BCE target 1 (pos) / 0 (neg)
    valid4 = jnp.concatenate([valid] * (1 + NUM_NEG), axis=0)
    acc_ref[...] += jnp.sum(_softplus(sign * pred) * valid4, axis=(0, 1), keepdims=True)

    # NOTE: contextpred_acc from the reference is never returned by forward(); dropped.

    @pl.when(t == pl.num_programs(0) - 1)
    def _():
        # loss_pos + NUM_NEG * loss_neg == (sum_pos + sum_neg) / n
        loss_ref[...] = acc_ref[...] / n


def cp_head(substruct_repr, context_repr, *, tile_n=None):
    n, h = substruct_repr.shape
    tn = min(512, _round_up(n, 8)) if tile_n is None else max(8, _round_up(tile_n, 8))
    mpad = _round_up(n, tn)
    if mpad != n and (mpad - n) < NUM_NEG:
        mpad += tn                         # guarantee room for the cyclic wrap rows
    nt = mpad // tn

    sub, ctx = substruct_repr, context_repr
    if mpad != n:
        sub = jnp.pad(sub, ((0, mpad - n), (0, 0)))
        # ctx pad rows n..n+NUM_NEG-1 hold the wrap rows ctx[(n+w) % n]; rest zeros.
        wrap = context_repr[jnp.arange(NUM_NEG) % n]
        extra = mpad - n - NUM_NEG
        parts = [context_repr, wrap]
        if extra > 0:
            parts.append(jnp.zeros((extra, h), context_repr.dtype))
        ctx = jnp.concatenate(parts, axis=0)

    kernel = functools.partial(cp_kernel, n=n, tn=tn)
    loss = pl.pallas_call(
        kernel,
        grid=(nt,),
        in_specs=[pl.BlockSpec((tn, h), lambda i: (i, 0)),                          # sub tile
                  pl.BlockSpec((tn, h), lambda i: (i, 0)),                          # ctx tile
                  pl.BlockSpec((8, h), lambda i: (((i + 1) % nt) * (tn // 8), 0))], # 8-row halo
        out_specs=pl.BlockSpec((1, 1), lambda i: (0, 0)),
        out_shape=jax.ShapeDtypeStruct((1, 1), jnp.float32),
        scratch_shapes=[pltpu.VMEM((1, 1), jnp.float32)],
        compiler_params=pltpu.CompilerParams(
            dimension_semantics=("arbitrary",),
            vmem_limit_bytes=_VMEM_LIMIT),
    )(sub, ctx, ctx)
    return loss[0, 0]


# ---------------------------------------------------------------------------
# AM (attribute masking) kernel: row-tiled Linear(H,119) + CrossEntropy.
# Each tile writes a lane-dense (8,128) partial-sum block -> the grid axis is
# "parallel" (megacore-friendly); the final reduction / divide is done in JAX.
# ---------------------------------------------------------------------------
def am_kernel(x_ref, w_ref, b_ref, t_ref, part_ref):
    # matmul in the inputs' native dtype (bf16-friendly), accumulate in f32
    logits = jnp.dot(x_ref[...], w_ref[...], preferred_element_type=jnp.float32)   # (TM, 128)
    logits = logits + b_ref[...].astype(jnp.float32)     # padded class cols get -1e30

    t = t_ref[...]                                       # (TM, 1) int32, -1 for padded rows
    valid = t >= 0
    col = jax.lax.broadcasted_iota(jnp.int32, logits.shape, 1)
    tmask = col == t

    row_max = jnp.max(logits, axis=1, keepdims=True)
    lse = jnp.log(jnp.sum(jnp.exp(logits - row_max), axis=1, keepdims=True)) + row_max
    tgt_logit = jnp.sum(jnp.where(tmask, logits, 0.0), axis=1, keepdims=True)
    nll = jnp.where(valid, lse - tgt_logit, 0.0)                                    # (TM, 1)

    s = jnp.sum(nll, axis=(0, 1), keepdims=True)                                    # (1, 1)
    part_ref[...] = jnp.broadcast_to(s, part_ref.shape)                             # (8, 128)
    # NOTE: accuracy / argmax branch dropped — forward() only consumes the loss.


def am_head(masked_node_repr, w, b, targets):
    m, h = masked_node_repr.shape
    x = masked_node_repr
    m8 = _round_up(max(m, 8), 8)
    tm = min(1024, m8)
    mpad = _round_up(m8, tm)
    if mpad != m:                           # pad by at most one tile; skipped when aligned
        x = jnp.pad(x, ((0, mpad - m), (0, 0)))
        targets = jnp.pad(targets, (0, mpad - m), constant_values=-1)
    t2 = targets.reshape(mpad, 1).astype(jnp.int32)
    nt = mpad // tm

    w = w if w.dtype == x.dtype else w.astype(x.dtype)   # native-dtype MXU path
    cp_ = w.shape[1]                                      # 128 (padded classes)

    partial = pl.pallas_call(
        am_kernel,
        grid=(nt,),
        in_specs=[pl.BlockSpec((tm, h), lambda i: (i, 0)),      # x tile (hidden untiled/unpadded)
                  pl.BlockSpec((h, cp_), lambda i: (0, 0)),     # W resident
                  pl.BlockSpec((1, cp_), lambda i: (0, 0)),     # bias resident
                  pl.BlockSpec((tm, 1), lambda i: (i, 0))],     # int32 targets column
        out_specs=pl.BlockSpec((8, 128), lambda i: (i, 0)),     # per-tile lane-dense partial
        out_shape=jax.ShapeDtypeStruct((nt * 8, 128), jnp.float32),
        compiler_params=pltpu.CompilerParams(
            dimension_semantics=("parallel",),
            vmem_limit_bytes=_VMEM_LIMIT),
    )(x, w, b, t2)
    return partial[::8, 0].sum() / m


# ---------------------------------------------------------------------------
# Module wrapper
# ---------------------------------------------------------------------------
class PretrainModulePallas:
    # TODO(synk): GNN tokenizer, VectorQuantizer codebook, Patch(), and the
    # EncoderLayer backbones are undefined external classes in the reference;
    # their (nodes, hidden) output representations are taken as inputs here.
    def __init__(self, hidden_size, key, param_dtype=jnp.float32):
        # Xavier-uniform init for the Linear(hidden_size, 119) head, zero bias.
        limit = (6.0 / (hidden_size + NUM_CLASSES)) ** 0.5
        w = jax.random.uniform(key, (hidden_size, NUM_CLASSES),
                               minval=-limit, maxval=limit, dtype=jnp.float32)
        cp_ = _round_up(NUM_CLASSES, 128)
        # classes padded 119 -> 128 once (lane-dense logits); hidden dim kept un-padded
        self.am_w = jnp.zeros((hidden_size, cp_), jnp.float32)\
            .at[:, :NUM_CLASSES].set(w).astype(param_dtype)
        # padded class columns get -1e30 bias so they never affect LSE; bias stays f32
        self.am_b = jnp.full((cp_,), NEG_INF_BIAS, jnp.float32)\
            .at[:NUM_CLASSES].set(0.0).reshape(1, cp_)

    @staticmethod
    def _global_mean_pool(node_repr, batch_ids, num_graphs):
        # glue: segment mean (global_mean_pool)
        sums = jax.ops.segment_sum(node_repr, batch_ids, num_segments=num_graphs)
        counts = jax.ops.segment_sum(jnp.ones((node_repr.shape[0], 1), jnp.float32),
                                     batch_ids, num_segments=num_graphs)
        return sums / jnp.maximum(counts, 1.0)

    def CP(self, batch_cp):
        substruct_repr = batch_cp["substruct_repr"]                 # (N, H)
        overlapped_node_repr = batch_cp["overlapped_node_repr"]     # (Nc, H)
        batch_ids = batch_cp["batch_overlapped_context"]            # (Nc,)
        context_repr = self._global_mean_pool(
            overlapped_node_repr, batch_ids, substruct_repr.shape[0])
        return cp_head(substruct_repr, context_repr)

    def AM(self, batch_am):
        node_repr = batch_am["node_repr"]                           # (Nn, H)
        masked_idx = batch_am["masked_atom_indices"]                # (M,)
        targets = batch_am["mask_node_label"]                       # (M,)
        masked_node_repr = node_repr[masked_idx]                    # glue gather
        return am_head(masked_node_repr, self.am_w, self.am_b, targets)

    def forward(self, batch):
        res = {}
        if "CP" in batch:
            res["CP"] = self.CP(batch["CP"])
        if "AM" in batch:
            res["AM"] = self.AM(batch["AM"])
        return res


# ---------------------------------------------------------------------------
# Pure-JAX references (for the in-script correctness check only)
# ---------------------------------------------------------------------------
def _cp_reference(sub, ctx):
    n = sub.shape[0]
    loss = jnp.sum(_softplus(-jnp.sum(sub * ctx, axis=1)))
    for k in range(1, NUM_NEG + 1):
        ctx_k = jnp.roll(ctx, -k, axis=0)          # ctx_k[i] = ctx[(i + k) % n]
        loss = loss + jnp.sum(_softplus(jnp.sum(sub * ctx_k, axis=1)))
    return loss / n


def _am_reference(x, w, b, t):
    logits = (x.astype(jnp.float32) @ w.astype(jnp.float32)[:, :NUM_CLASSES]
              + b[0, :NUM_CLASSES])
    lse = jax.scipy.special.logsumexp(logits, axis=1)
    tgt = jnp.take_along_axis(logits, t[:, None].astype(jnp.int32), axis=1)[:, 0]
    return jnp.mean(lse - tgt)


def _close(a, b, tol=1e-2):
    a, b = float(a), float(b)
    return abs(a - b) <= tol * max(1.0, abs(b))


if __name__ == "__main__":
    key = jax.random.PRNGKey(0)
    k0, k1, k2, k3, k4 = jax.random.split(key, 5)

    hidden = 32
    n_graphs = 13         # substruct / context graphs for CP (exercises row padding + wrap)
    n_ctx_nodes = 37      # overlapped context nodes
    n_nodes = 16          # nodes for AM
    n_masked = 10         # masked atoms (exercises AM row padding / -1 masking)

    module = PretrainModulePallas(hidden, k0)

    batch = {
        "CP": {
            "substruct_repr": jax.random.normal(k1, (n_graphs, hidden), jnp.float32),
            "overlapped_node_repr": jax.random.normal(k2, (n_ctx_nodes, hidden), jnp.float32),
            "batch_overlapped_context": jnp.arange(n_ctx_nodes, dtype=jnp.int32) % n_graphs,
        },
        "AM": {
            "node_repr": jax.random.normal(k3, (n_nodes, hidden), jnp.float32),
            "masked_atom_indices": jnp.arange(n_masked, dtype=jnp.int32),
            "mask_node_label": jax.random.randint(k4, (n_masked,), 0, NUM_CLASSES,
                                                  dtype=jnp.int32),
        },
    }

    res = module.forward(batch)
    jax.block_until_ready(res)
    assert jnp.isfinite(res["CP"]) and jnp.isfinite(res["AM"])

    # --- correctness checks against pure-JAX references ---
    sub = batch["CP"]["substruct_repr"]
    ctx = module._global_mean_pool(batch["CP"]["overlapped_node_repr"],
                                   batch["CP"]["batch_overlapped_context"], n_graphs)
    cp_ref = _cp_reference(sub, ctx)
    masked_x = batch["AM"]["node_repr"][batch["AM"]["masked_atom_indices"]]
    am_ref = _am_reference(masked_x, module.am_w, module.am_b,
                           batch["AM"]["mask_node_label"])

    assert _close(res["CP"], cp_ref), (float(res["CP"]), float(cp_ref))
    assert _close(res["AM"], am_ref), (float(res["AM"]), float(am_ref))

    # also exercise the multi-tile CP path (halo / cyclic wrap across tile boundaries)
    cp_multi = cp_head(sub, ctx, tile_n=8)
    jax.block_until_ready(cp_multi)
    assert _close(cp_multi, cp_ref), (float(cp_multi), float(cp_ref))

    print("KERNEL_OK")
</pallas_src>

<mosaic_0001>
module attributes {stable_mosaic.version = 11 : i64} {
  func.func @cp_kernel(%arg0: i32, %arg1: memref<16x32xf32, #tpu.memory_space<vmem>>, %arg2: memref<16x32xf32, #tpu.memory_space<vmem>>, %arg3: memref<8x32xf32, #tpu.memory_space<vmem>>, %arg4: memref<1x1xf32, #tpu.memory_space<vmem>>, %arg5: memref<1x1xf32, #tpu.memory_space<vmem>>) attributes {dimension_semantics = [#tpu.dimension_semantics<arbitrary>], iteration_bounds = array<i64: 1>, scalar_prefetch = 0 : i64, scratch_operands = 1 : i64, tpu.core_type = #tpu.core_type<tc>, window_params = [{transform_indices = @transform_0, window_bounds = array<i64: 16, 32>}, {transform_indices = @transform_1, window_bounds = array<i64: 16, 32>}, {transform_indices = @transform_2, window_bounds = array<i64: 8, 32>}, {pipeline_mode = #tpu.pipeline_mode<synchronous>, transform_indices = @transform_3, window_bounds = array<i64: 1, 1>}]} {
    %c0_i32 = arith.constant 0 : i32
    %0 = arith.cmpi eq, %arg0, %c0_i32 : i32
    %1 = arith.extui %0 : i1 to i32
    %c0_i32_0 = arith.constant 0 : i32
    %2 = arith.cmpi ne, %1, %c0_i32_0 : i32
    scf.if %2 {
      %cst_20 = arith.constant 0.000000e+00 : f32
      %59 = vector.broadcast %cst_20 : f32 to vector<1x1xf32>
      %c0_21 = arith.constant 0 : index
      %c0_22 = arith.constant 0 : index
      %60 = vector.load %arg5[%c0_21, %c0_22] : memref<1x1xf32, #tpu.memory_space<vmem>>, vector<1x1xf32>
      tpu.vector_store %arg5[%c0_21, %c0_22], %59 {strides = array<i32>} : memref<1x1xf32, #tpu.memory_space<vmem>>, vector<1x1xf32>,
    } else {
    }
    %c0 = arith.constant 0 : index
    %c0_1 = arith.constant 0 : index
    %3 = vector.load %arg1[%c0, %c0_1] : memref<16x32xf32, #tpu.memory_space<vmem>>, vector<16x32xf32>
    %c0_2 = arith.constant 0 : index
    %c0_3 = arith.constant 0 : index
    %4 = vector.load %arg2[%c0_2, %c0_3] : memref<16x32xf32, #tpu.memory_space<vmem>>, vector<16x32xf32>
    %c0_4 = arith.constant 0 : index
    %c0_5 = arith.constant 0 : index
    %5 = vector.load %arg3[%c0_4, %c0_5] : memref<8x32xf32, #tpu.memory_space<vmem>>, vector<8x32xf32>
    %6 = tpu.iota {dimensions = array<i32: 0>} : vector<16x1xi32>
    %c16_i32 = arith.constant 16 : i32
    %7 = arith.muli %arg0, %c16_i32 : i32
    %8 = vector.broadcast %7 : i32 to vector<16x1xi32>
    %9 = arith.addi %8, %6 : vector<16x1xi32>
    %c13_i32 = arith.constant 13 : i32
    %10 = vector.broadcast %c13_i32 : i32 to vector<16x1xi32>
    %11 = arith.cmpi slt, %9, %10 : vector<16x1xi32>
    %12 = arith.extui %11 : vector<16x1xi1> to vector<16x1xi32>
    %13 = arith.sitofp %12 : vector<16x1xi32> to vector<16x1xf32>
    %14 = tpu.concatenate %4, %5 in 0 : vector<16x32xf32>, vector<8x32xf32> -> vector<24x32xf32>
    %15 = arith.mulf %3, %4 : vector<16x32xf32>
    %c23_i32 = arith.constant 23 : i32
    %16 = tpu.dynamic_rotate %14 by %c23_i32 dim 0 : vector<24x32xf32>, i32 -> vector<24x32xf32>
    %17 = vector.extract_strided_slice %16 {offsets = [0, 0], sizes = [16, 32], strides = [1, 1]} : vector<24x32xf32> to vector<16x32xf32>
    %18 = arith.mulf %3, %17 : vector<16x32xf32>
    %c22_i32 = arith.constant 22 : i32
    %19 = tpu.dynamic_rotate %14 by %c22_i32 dim 0 : vector<24x32xf32>, i32 -> vector<24x32xf32>
    %20 = vector.extract_strided_slice %19 {offsets = [0, 0], sizes = [16, 32], strides = [1, 1]} : vector<24x32xf32> to vector<16x32xf32>
    %21 = arith.mulf %3, %20 : vector<16x32xf32>
    %c21_i32 = arith.constant 21 : i32
    %22 = tpu.dynamic_rotate %14 by %c21_i32 dim 0 : vector<24x32xf32>, i32 -> vector<24x32xf32>
    %23 = vector.extract_strided_slice %22 {offsets = [0, 0], sizes = [16, 32], strides = [1, 1]} : vector<24x32xf32> to vector<16x32xf32>
    %24 = arith.mulf %3, %23 : vector<16x32xf32>
    %25 = tpu.concatenate %15, %18, %21, %24 in 0 : vector<16x32xf32>, vector<16x32xf32>, vector<16x32xf32>, vector<16x32xf32> -> vector<64x32xf32>
    %cst = arith.constant 1.000000e+00 : f32
    %26 = vector.broadcast %cst : f32 to vector<32x128xf32>
    %cst_6 = arith.constant dense<0.000000e+00> : vector<64x128xf32>
    %27 = tpu.matmul %25, %26, %cst_6 {dimension_numbers = #tpu.dot_dimension_numbers<[1], [0], [0], [1], [0, 0, 1, 1], [], []>} : vector<64x32xf32>, vector<32x128xf32>, vector<64x128xf32> -> vector<64x128xf32>
    %28 = vector.extract_strided_slice %27 {offsets = [0, 0], sizes = [64, 1], strides = [1, 1]} : vector<64x128xf32> to vector<64x1xf32>
    %29 = tpu.iota {dimensions = array<i32: 0>} : vector<64x1xi32>
    %c16_i32_7 = arith.constant 16 : i32
    %30 = vector.broadcast %c16_i32_7 : i32 to vector<64x1xi32>
    %31 = arith.cmpi slt, %29, %30 : vector<64x1xi32>
    %cst_8 = arith.constant -1.000000e+00 : f32
    %cst_9 = arith.constant 1.000000e+00 : f32
    %32 = vector.broadcast %cst_8 : f32 to vector<64x1xf32>
    %33 = vector.broadcast %cst_9 : f32 to vector<64x1xf32>
    %34 = arith.select %31, %32, %33 : vector<64x1xi1>, vector<64x1xf32>
    %35 = tpu.concatenate %13, %13, %13, %13 in 0 : vector<16x1xf32>, vector<16x1xf32>, vector<16x1xf32>, vector<16x1xf32> -> vector<64x1xf32>
    %c0_10 = arith.constant 0 : index
    %c0_11 = arith.constant 0 : index
    %36 = vector.load %arg5[%c0_10, %c0_11] : memref<1x1xf32, #tpu.memory_space<vmem>>, vector<1x1xf32>
    %37 = arith.mulf %34, %28 : vector<64x1xf32>
    %cst_12 = arith.constant 0.000000e+00 : f32
    %38 = vector.broadcast %cst_12 : f32 to vector<64x1xf32>
    %39 = arith.maximumf %37, %38 : vector<64x1xf32>
    %40 = math.absf %37 : vector<64x1xf32>
    %cst_13 = arith.constant 0.000000e+00 : f32
    %41 = vector.broadcast %cst_13 : f32 to vector<64x1xf32>
    %42 = arith.subf %41, %40 : vector<64x1xf32>
    %43 = math.exp %42 : vector<64x1xf32>
    %cst_14 = arith.constant 1.000000e+00 : f32
    %44 = vector.broadcast %cst_14 : f32 to vector<64x1xf32>
    %45 = arith.addf %44, %43 : vector<64x1xf32>
    %46 = math.log %45 : vector<64x1xf32>
    %47 = arith.addf %39, %46 : vector<64x1xf32>
    %48 = arith.mulf %47, %35 : vector<64x1xf32>
    %49 = vector.shape_cast %48 : vector<64x1xf32> to vector<1x64x1xf32>
    %cst_15 = arith.constant dense<0.000000e+00> : vector<1xf32>
    %50 = vector.multi_reduction <add>, %49, %cst_15 [1, 2] : vector<1x64x1xf32> to vector<1xf32>
    %51 = vector.shape_cast %50 : vector<1xf32> to vector<1x1x1xf32>
    %52 = vector.extract %51[0, 0, 0] : f32 from vector<1x1x1xf32>
    %53 = vector.broadcast %52 : f32 to vector<1x1xf32>
    %54 = arith.addf %36, %53 : vector<1x1xf32>
    %c0_16 = arith.constant 0 : index
    %c0_17 = arith.constant 0 : index
    %55 = vector.load %arg5[%c0_16, %c0_17] : memref<1x1xf32, #tpu.memory_space<vmem>>, vector<1x1xf32>
    tpu.vector_store %arg5[%c0_16, %c0_17], %54 {strides = array<i32>} : memref<1x1xf32, #tpu.memory_space<vmem>>, vector<1x1xf32>,
    %c0_i32_18 = arith.constant 0 : i32
    %56 = arith.cmpi eq, %arg0, %c0_i32_18 : i32
    %57 = arith.extui %56 : i1 to i32
    %c0_i32_19 = arith.constant 0 : i32
    %58 = arith.cmpi ne, %57, %c0_i32_19 : i32
    scf.if %58 {
      %c0_20 = arith.constant 0 : index
      %c0_21 = arith.constant 0 : index
      %59 = vector.load %arg5[%c0_20, %c0_21] : memref<1x1xf32, #tpu.memory_space<vmem>>, vector<1x1xf32>
      %cst_22 = arith.constant 1.300000e+01 : f32
      %60 = vector.broadcast %cst_22 : f32 to vector<1x1xf32>
      %61 = arith.divf %59, %60 : vector<1x1xf32>
      %c0_23 = arith.constant 0 : index
      %c0_24 = arith.constant 0 : index
      %62 = vector.load %arg4[%c0_23, %c0_24] : memref<1x1xf32, #tpu.memory_space<vmem>>, vector<1x1xf32>
      tpu.vector_store %arg4[%c0_23, %c0_24], %61 {strides = array<i32>} : memref<1x1xf32, #tpu.memory_space<vmem>>, vector<1x1xf32>,
    } else {
    }
    return
  }
  func.func @transform_0(%arg0: i32) -> (i32, i32) {
    %c0_i32 = arith.constant 0 : i32
    %c0_i32_0 = arith.constant 0 : i32
    return %arg0, %c0_i32 : i32, i32
  }
  func.func @transform_1(%arg0: i32) -> (i32, i32) {
    %c0_i32 = arith.constant 0 : i32
    %c0_i32_0 = arith.constant 0 : i32
    return %arg0, %c0_i32 : i32, i32
  }
  func.func @transform_2(%arg0: i32) -> (i32, i32) {
    %c1_i32 = arith.constant 1 : i32
    %0 = arith.addi %arg0, %c1_i32 : i32
    %c1_i32_0 = arith.constant 1 : i32
    %c0_i32 = arith.constant 0 : i32
    %1 = arith.cmpi eq, %c1_i32_0, %c0_i32 : i32
    %c1_i32_1 = arith.constant 1 : i32
    %2 = arith.select %1, %c1_i32_1, %c1_i32_0 : i32
    %3 = arith.remsi %0, %2 : i32
    %c0_i32_2 = arith.constant 0 : i32
    %4 = arith.cmpi ne, %3, %c0_i32_2 : i32
    %c0_i32_3 = arith.constant 0 : i32
    %5 = arith.cmpi slt, %3, %c0_i32_3 : i32
    %c0_i32_4 = arith.constant 0 : i32
    %6 = arith.cmpi slt, %2, %c0_i32_4 : i32
    %7 = arith.xori %5, %6 : i1
    %8 = arith.andi %7, %4 : i1
    %9 = arith.addi %3, %2 : i32
    %10 = arith.select %8, %9, %3 : i32
    %c2_i32 = arith.constant 2 : i32
    %11 = arith.muli %10, %c2_i32 : i32
    %c0_i32_5 = arith.constant 0 : i32
    %c0_i32_6 = arith.constant 0 : i32
    return %11, %c0_i32_5 : i32, i32
  }
  func.func @transform_3(%arg0: i32) -> (i32, i32) {
    %c0_i32 = arith.constant 0 : i32
    %c0_i32_0 = arith.constant 0 : i32
    %c0_i32_1 = arith.constant 0 : i32
    return %c0_i32, %c0_i32_0 : i32, i32
  }
}

</mosaic_0001>

<bundles_post_ra>
// kernel: tpu_custom_call.1
= control target key start
LH: loop header
LB: loop body
LE: loop exit
PB: predicated region body
PF: predicated region fallthrough
CT: control target
= control target key end

     0   :  { %8 = vsyncpa [#allocation4], 0  ;;  %s679_s0 = inlined_call_operand.hbm [shape: f32[16,32], index: 0, kind: input, shape index: {}]   ;;  %s680_s1 = inlined_call_operand.hbm [shape: f32[16,32], index: 1, kind: input, shape index: {}]   ;;  %s681_s2 = inlined_call_operand.hbm [shape: f32[16,32], index: 2, kind: input, shape index: {}]   ;;  %s682_s3 = inlined_call_operand.hbm [shape: f32[1,1], index: 3, kind: output, shape index: {}]  }
   0x1   :  { %9 = vsyncpa [#allocation7], 0 }
   0x2   :  { %10 = vsyncpa [#allocation5], 0  ;;  %s574_s12 = smov [#allocation6]   ;;  %s575_s14 = smov [#allocation3]  }
   0x3   :  { %s28_s13 = sshll.u32 %s574_s12, 4  ;;  %s16_s15 = sshll.u32 %s575_s14, 4  ;;  %s29_s13 = int_to_ptr.vmem [resolvable:$true] %s28_s13  ;;  %s17_s15 = int_to_ptr.vmem [resolvable:$true] %s16_s15 }
   0x4   :  { %s496_s16 = scalar_lea.vmem %s29_s13, 256  ;;  %p501_p1 = scmp.lt.s32.totalorder %s29_s13, %s29_s13 }
   0x5   :  { %p497_p0 = scmp.ne.s32.totalorder %s29_s13, %s496_s16  ;;  %p502_p2 = scmp.lt.s32.totalorder %s496_s16, %s496_s16 }
   0x7   :  { %p503_p3 = por %p502_p2, %p501_p1 }
   0x9   :  { %p504_p4 = pnand %p503_p3, %p497_p0 }
   0xb   :  { %507 = shalt.err (!%p504_p4)
}
   0xc   :  { %s576_s17 = smov 128   ;;  %s577_s18 = smov 8  }
   0xd   :  { %34 = dma.hbm_to_vmem [thread:$0]  %s680_s1, 256, %s29_s13, [#allocation7], %s576_s17, %s576_s17, %s577_s18  }
   0xe   :  { %s516_s21 = scalar_lea.vmem %s17_s15, 256  ;;  %p521_p6 = scmp.lt.s32.totalorder %s17_s15, %s17_s15 }
   0xf   :  { %p517_p5 = scmp.ne.s32.totalorder %s17_s15, %s516_s21  ;;  %p522_p7 = scmp.lt.s32.totalorder %s516_s21, %s516_s21 }
  0x11   :  { %p523_p8 = por %p522_p7, %p521_p6 }
  0x13   :  { %p524_p9 = pnand %p523_p8, %p517_p5 }
  0x15   :  { %527 = shalt.err (!%p524_p9)
}
  0x16   :  { %22 = dma.hbm_to_vmem [thread:$0]  %s679_s0, 256, %s17_s15, [#allocation4], %s576_s17, %s576_s17, %s577_s18  }
  0x17   :  { %s578_s24 = smov [#allocation8]  }
  0x18   :  { %s41_s25 = sshll.u32 %s578_s24, 4  ;;  %s42_s25 = int_to_ptr.vmem [resolvable:$true] %s41_s25 }
  0x19   :  { %s536_s26 = scalar_lea.vmem %s42_s25, 128  ;;  %p541_p11 = scmp.lt.s32.totalorder %s42_s25, %s42_s25 }
  0x1a   :  { %p537_p10 = scmp.ne.s32.totalorder %s42_s25, %s536_s26  ;;  %p542_p12 = scmp.lt.s32.totalorder %s536_s26, %s536_s26 }
  0x1c   :  { %p543_p13 = por %p542_p12, %p541_p11 }
  0x1e   :  { %p544_p0 = pnand %p543_p13, %p537_p10 }
  0x20   :  { %547 = shalt.err (!%p544_p0)
}
  0x21   :  { %44 = dma.hbm_to_vmem [thread:$0]  %s681_s2, 128, %s42_s25, [#allocation7]  }
  0x22   :  { %568 = dma.done.wait [#allocation4], 256  }
  0x23   :  { %569 = vsyncadd [#allocation4], 4294967040 }
  0x24   :  { %570 = dma.done.wait [#allocation7], 384  }
  0x25   :  { %571 = vsyncadd [#allocation7], 4294966912  ;;  %v65_v0 = vlaneseq  ;;  %v579_v1 = vmov 1.0   ;;  %v60_v3 = vld [vmem:[#allocation3] sm:$0xff]  ;;  %v62_v4 = vld [vmem:[#allocation6] sm:$0xff]  ;;  %vm104_vm0 = vcmask 261120  }
  0x26   :  { %418 = vmatprep.subr.mxu0 %v579_v1  ;;  %438 = vmatprep.subr.mxu1 %v579_v1  ;;  %v61_v5 = vld [vmem:[#allocation3 + $0x8] sm:$0xff]  ;;  %v78_v6 = vmul.f32 %v62_v4, %v60_v3  ;;  %v80_v7 = vrot.slane %v62_v4, 1  ;;  %v96_v8 = vrot.slane %v62_v4, 3  ;;  %v63_v9 = vld [vmem:[#allocation6 + $0x8] sm:$0xff]  ;;  %v64_v10 = vld [vmem:[#allocation8] sm:$0xff]  ;;  %v88_v11 = vrot.slane %v62_v4, 2 }
  0x27   :  { %419 = vmatpush3.msra.mxu0 %v579_v1  ;;  %442 = vmatpush3.msra.mxu1 %v579_v1  ;;  %v611_v2 = vshrl.u32 %v65_v0, 7  ;;  %v79_v12 = vmul.f32 %v63_v9, %v61_v5  ;;  %v89_v13 = vrot.slane %v63_v9, 2  ;;  %v90_v14 = vrot.slane %v64_v10, 2  ;;  %s581_s2 = smov [#allocation9]  }
  0x28   :  { %420 = vmatprep.subr.mxu0 %v579_v1  ;;  %439 = vmatprep.subr.mxu1 %v579_v1  ;;  %v81_v15 = vrot.slane %v63_v9, 1  ;;  %v82_v16 = vrot.slane %v64_v10, 1  ;;  %v97_v17 = vrot.slane %v63_v9, 3  ;;  %v98_v18 = vrot.slane %v64_v10, 3  ;;  %s387_s28 = sshll.u32 %s581_s2, 4  ;;  %s388_s28 = int_to_ptr.vmem [resolvable:$true] %s387_s28 }
  0x29   :  { %421 = vmatpush3.msra.mxu0 %v579_v1  ;;  %443 = vmatpush3.msra.mxu1 %v579_v1  ;;  %vm91_vm1 = vcmp.lt.s32.totalorder %v611_v2, 6  ;;  %vm83_vm2 = vcmp.lt.s32.totalorder %v611_v2, 7  ;;  %vm99_vm3 = vcmp.lt.s32.totalorder %v611_v2, 5  ;;  %vm345_vm5 = vcmask 7168   ;;  %s548_s29 = scalar_lea.vmem %s388_s28, 16  ;;  %s552_s30 = scalar_lea.vmem %s388_s28, 32 }
  0x2a   :  { %422 = vmatprep.subr.mxu0 %v579_v1  ;;  %440 = vmatprep.subr.mxu1 %v579_v1  ;;  %v92_v19 = vsel %vm91_vm1, %v89_v13, %v90_v14  ;;  %v93_v20 = vsel %vm91_vm1, %v88_v11, %v89_v13  ;;  %v85_v21 = vsel %vm83_vm2, %v80_v7, %v81_v15  ;;  %vm58_vm6 = vcmask 0   ;;  %p549_p1 = scmp.ne.s32.totalorder %s388_s28, %s548_s29  ;;  %p553_p2 = scmp.lt.s32.totalorder %s388_s28, %s388_s28 }
  0x2b   :  { %423 = vmatpush3.msra.mxu0 %v579_v1  ;;  %444 = vmatpush3.msra.mxu1 %v579_v1  ;;  %v94_v22 = vmul.f32 %v93_v20, %v60_v3  ;;  %v86_v23 = vmul.f32 %v85_v21, %v60_v3  ;;  %v95_v24 = vmul.f32 %v92_v19, %v61_v5  ;;  %p554_p3 = scmp.lt.s32.totalorder %s552_s30, %s548_s29 }
  0x2c   :  { %424 = vmatprep.subr.mxu0 %v579_v1  ;;  %441 = vmatprep.subr.mxu1 %v579_v1  ;;  %v84_v25 = vsel %vm83_vm2, %v81_v15, %v82_v16  ;;  %v101_v27 = vsel %vm99_vm3, %v96_v8, %v97_v17  ;;  %v100_v28 = vsel %vm99_vm3, %v97_v17, %v98_v18  ;;  %v67_v18 = vadd.s32 8, %v611_v2 }
  0x2d   :  { %425 = vmatpush3.msra.mxu0 %v579_v1  ;;  %445 = vmatpush3.msra.mxu1 %v579_v1  ;;  %v87_v26 = vmul.f32 %v84_v25, %v61_v5  ;;  %v102_v29 = vmul.f32 %v101_v27, %v60_v3  ;;  %v103_v30 = vmul.f32 %v100_v28, %v61_v5  ;;  %p555_p4 = por %p554_p3, %p553_p2 }
  0x2e   :  { %426 = vmatprep.mubr.msk.f32.mxu0 %vm104_vm0, %v78_v6  ;;  %432 = vmatprep.mubr.msk.f32.mxu1 %vm104_vm0, %v94_v22  ;;  %vm73_vm4 = vcmp.lt.s32.totalorder %v67_v18, 13 }
  0x2f   :  { %427 = vmatmul.mubr.msk.f32.vlgmr.msra.gmra.mxu0 %vm104_vm0, %v79_v12  ;;  %433 = vmatmul.mubr.msk.f32.vlgmr.msra.gmra.mxu1 %vm104_vm0, %v95_v24  ;;  %p556_p5 = pnand %p555_p4, %p549_p1 }
  0x30   :  { %429 = vmatprep.mubr.msk.f32.mxu0 %vm104_vm0, %v86_v23  ;;  %435 = vmatprep.mubr.msk.f32.mxu1 %vm104_vm0, %v102_v29  ;;  %v580_v23 = vmov 0.0  }
  0x31   :  { %v397_v24 = vsel %vm73_vm4, 1.0, %v580_v23  ;;  %59 = vst.msk [vmem:[#allocation2] sm:$0x1] %vm58_vm6, %v580_v23 }
  0x33   :  { %430 = vmatmul.mubr.msk.f32.gmra.mxu0 %vm104_vm0, %v87_v26  ;;  %436 = vmatmul.mubr.msk.f32.gmra.mxu1 %vm104_vm0, %v103_v30 }
  0xef   :  { %v428_v31 = vpop.f32.mrf.mxu0  ;;  %v637_v36 = vpop.f32.mrf.mxu1 }
  0xf0   :  { %v632_v32 = vmul.f32 -1.0, %v428_v31  ;;  %v278_v40 = vand.u32 2147483647, %v637_v36 }
  0xf1   :  { %v195_v33 = vpop.f32.mrf.mxu0  ;;  %v644_v42 = vpop.f32.mrf.mxu1 }
  0xf2   :  { %v274_v34 = vand.u32 2147483647, %v632_v32  ;;  %v635_v35 = vmul.f32 -1.0, %v195_v33  ;;  %v277_v46 = vand.u32 2147483647, %v644_v42  ;;  %v286_v47 = vsub.f32 0.0, %v278_v40 }
  0xf3   :  { %v639_v37 = vpop.f32.mrf.mxu0  ;;  %v650_v50 = vpop.f32.mrf.mxu1  ;;  %v266_v20 = vmax.f32 %v632_v32, 0.0  ;;  %v270_v32 = vmax.f32 %v637_v36, 0.0 }
  0xf4   :  { %v282_v38 = vsub.f32 0.0, %v274_v34  ;;  %v273_v39 = vand.u32 2147483647, %v635_v35  ;;  %v276_v41 = vand.u32 2147483647, %v639_v37  ;;  %v285_v52 = vsub.f32 0.0, %v277_v46 }
  0xf5   :  { %v646_v43 = vpop.f32.mrf.mxu0  ;;  %v299_v53 = vmul.f32 1.442695, %v286_v47  ;;  %v652_v56 = vpop.f32.mrf.mxu1  ;;  %v280_v58 = vand.u32 2147483647, %v650_v50  ;;  %v265_v27 = vmax.f32 %v635_v35, 0.0  ;;  %v268_v30 = vmax.f32 %v639_v37, 0.0 }
  0xf6   :  { %v291_v44 = vmul.f32 1.442695, %v282_v38  ;;  %v281_v45 = vsub.f32 0.0, %v273_v39  ;;  %v284_v48 = vsub.f32 0.0, %v276_v41  ;;  %v275_v49 = vand.u32 2147483647, %v646_v43 }
  0xf7   :  { %v297_v57 = vmul.f32 1.442695, %v285_v52  ;;  %v279_v60 = vand.u32 2147483647, %v652_v56  ;;  %v288_v61 = vsub.f32 0.0, %v280_v58  ;;  %v267_v41 = vmax.f32 %v646_v43, 0.0 }
  0xf8   :  { %456 = vpow2.f32 %v291_v44  ;;  %v289_v51 = vmul.f32 1.442695, %v281_v45  ;;  %v295_v54 = vmul.f32 1.442695, %v284_v48  ;;  %v283_v55 = vsub.f32 0.0, %v275_v49 }
  0xf9   :  { %v287_v62 = vsub.f32 0.0, %v279_v60  ;;  %v303_v63 = vmul.f32 1.442695, %v288_v61  ;;  %v269_v37 = vmax.f32 %v644_v42, 0.0  ;;  %v272_v43 = vmax.f32 %v650_v50, 0.0 }
  0xfa   :  { %458 = vpow2.f32 %v289_v51  ;;  %v293_v59 = vmul.f32 1.442695, %v283_v55 }
  0xfb   :  { %460 = vpow2.f32 %v299_v53  ;;  %v301_v0 = vmul.f32 1.442695, %v287_v62  ;;  %v271_v62 = vmax.f32 %v652_v56, 0.0 }
  0xfc   :  { %462 = vpow2.f32 %v295_v54 }
  0xfd   :  { %464 = vpow2.f32 %v297_v57 }
  0xfe   :  { %466 = vpow2.f32 %v293_v59 }
  0xff   :  { %468 = vpow2.f32 %v303_v63 }
 0x100   :  { %470 = vpow2.f32 %v301_v0 }
 0x105   :  { %v457_v1 = vpop.eup %456 }
 0x106   :  { %v306_v3 = vadd.f32 1.0, %v457_v1 }
 0x107   :  { %v459_v4 = vpop.eup %458 }
 0x108   :  { %v461_v5 = vpop.eup %460  ;;  %472 = vlog2.f32 %v306_v3  ;;  %v305_v6 = vadd.f32 1.0, %v459_v4 }
 0x109   :  { %v463_v7 = vpop.eup %462  ;;  %v310_v8 = vadd.f32 1.0, %v461_v5 }
 0x10a   :  { %v465_v9 = vpop.eup %464  ;;  %474 = vlog2.f32 %v305_v6  ;;  %v308_v10 = vadd.f32 1.0, %v463_v7 }
 0x10b   :  { %v467_v11 = vpop.eup %466  ;;  %476 = vlog2.f32 %v310_v8  ;;  %v309_v12 = vadd.f32 1.0, %v465_v9 }
 0x10c   :  { %478 = vlog2.f32 %v308_v10  ;;  %v307_v13 = vadd.f32 1.0, %v467_v11  ;;  %v469_v14 = vpop.eup %468 }
 0x10d   :  { %480 = vlog2.f32 %v309_v12  ;;  %v471_v15 = vpop.eup %470  ;;  %v312_v16 = vadd.f32 1.0, %v469_v14 }
 0x10e   :  { %482 = vlog2.f32 %v307_v13  ;;  %v311_v17 = vadd.f32 1.0, %v471_v15  ;;  %v256_v15 = vld [vmem:[#allocation2] sm:$0x1] }
 0x10f   :  { %484 = vlog2.f32 %v312_v16 }
 0x110   :  { %486 = vlog2.f32 %v311_v17 }
 0x115   :  { %v473_v19 = vpop.eup %472 }
 0x116   :  { %v316_v21 = vmul.f32 0.6931472, %v473_v19 }
 0x117   :  { %v475_v22 = vpop.eup %474 }
 0x118   :  { %v477_v25 = vpop.eup %476  ;;  %v330_v26 = vadd.f32 %v316_v21, %v266_v20  ;;  %v314_v28 = vmul.f32 0.6931472, %v475_v22 }
 0x119   :  { %v479_v29 = vpop.eup %478  ;;  %v324_v34 = vmul.f32 0.6931472, %v477_v25 }
 0x11a   :  { %v481_v2 = vpop.eup %480  ;;  %v338_v31 = vmul.f32 %v397_v24, %v330_v26  ;;  %v329_v33 = vadd.f32 %v314_v28, %v265_v27  ;;  %v320_v38 = vmul.f32 0.6931472, %v479_v29 }
 0x11b   :  { %v483_v39 = vpop.eup %482  ;;  %v322_v40 = vmul.f32 0.6931472, %v481_v2  ;;  %v334_v51 = vadd.f32 %v324_v34, %v270_v32 }
 0x11c   :  { %v346_v44 = vsel %vm345_vm5, %v329_v33, 0.0  ;;  %v332_v45 = vadd.f32 %v320_v38, %v268_v30  ;;  %v318_v35 = vmul.f32 0.6931472, %v483_v39  ;;  %v347_v46 = vsel %vm345_vm5, %v338_v31, 0.0  ;;  %v485_v47 = vpop.eup %484 }
 0x11d   :  { %v348_v48 = vadd.f32 %v347_v46, %v346_v44  ;;  %v487_v49 = vpop.eup %486  ;;  %v328_v54 = vmul.f32 0.6931472, %v485_v47  ;;  %v333_v55 = vadd.f32 %v322_v40, %v269_v37  ;;  %v342_v59 = vmul.f32 %v397_v24, %v334_v51 }
 0x11e   :  { %v340_v52 = vmul.f32 %v397_v24, %v332_v45  ;;  %v331_v53 = vadd.f32 %v318_v35, %v267_v41  ;;  %v326_v57 = vmul.f32 0.6931472, %v487_v49 }
 0x11f   :  { %v336_v61 = vadd.f32 %v328_v54, %v272_v43  ;;  %v353_v63 = vsel %vm345_vm5, %v333_v55, 0.0  ;;  %v355_v4 = vsel %vm345_vm5, %v342_v59, 0.0 }
 0x120   :  { %v349_v36 = vsel %vm345_vm5, %v331_v53, 0.0  ;;  %v351_v60 = vsel %vm345_vm5, %v340_v52, 0.0  ;;  %v335_v0 = vadd.f32 %v326_v57, %v271_v62 }
 0x121   :  { %v350_v58 = vadd.f32 %v349_v36, %v348_v48  ;;  %v344_v3 = vmul.f32 %v397_v24, %v336_v61 }
 0x122   :  { %v357_v6 = vsel %vm345_vm5, %v335_v0, 0.0 }
 0x123   :  { %v352_v42 = vadd.f32 %v351_v60, %v350_v58  ;;  %v359_v7 = vsel %vm345_vm5, %v344_v3, 0.0 }
 0x125   :  { %v354_v1 = vadd.f32 %v353_v63, %v352_v42 }
 0x127   :  { %v356_v5 = vadd.f32 %v355_v4, %v354_v1 }
 0x129   :  { %v358_v50 = vadd.f32 %v357_v6, %v356_v5 }
 0x12b   :  { %v360_v8 = vadd.f32 %v359_v7, %v358_v50 }
 0x12d   :  { %361 = vadd.xlane.f32.xlu0 %v360_v8 }
 0x1b6   :  { %v362_v56 = vpop.xlane.xlu0 %361 }
 0x1b7   :  { %v363_v9 = vrot.slane %v362_v56, 4 }
 0x1b9   :  { %v364_v10 = vadd.f32 %v363_v9, %v362_v56 }
 0x1bb   :  { %v365_v11 = vrot.slane %v364_v10, 2 }
 0x1bd   :  { %v366_v12 = vadd.f32 %v365_v11, %v364_v10 }
 0x1bf   :  { %v367_v13 = vrot.slane %v366_v12, 1 }
 0x1c1   :  { %v368_v14 = vadd.f32 %v367_v13, %v366_v12 }
 0x1c3   :  { %446 = vpush %v368_v14 }
 0x1f4   :  { %s447_s0 = spop %446 }
 0x1f5   :  { %v370_v16 = vstv %s447_s0 }
 0x1f6   :  { %v371_v17 = vadd.f32 %v370_v16, %v256_v15 }
 0x1f8   :  { %373 = vst.msk [vmem:[#allocation2] sm:$0x1] %vm58_vm6, %v371_v17 }
 0x1ff   :  { %v377_v18 = vld [vmem:[#allocation2] sm:$0x1] }
 0x200   :  { %v379_v19 = vmul.f32 0.07692308, %v377_v18 }
 0x202   :  { %380 = vst.msk [vmem:[#allocation9] sm:$0x1] %vm58_vm6, %v379_v19 }
 0x203   :  { %559 = shalt.err (!%p556_p5)
}
 0x204   :  { %390 = dma.vmem_to_hbm [thread:$0]  %s388_s28, 16, %s682_s3, [#allocation5]  }
 0x205   :  { %572 = dma.done.wait [#allocation5], 16  }
 0x206   :  { %573 = vsyncadd [#allocation5], 4294967280 }
 0x207   :  { %394 = vsyncpa [#allocation4], 1 }
 0x208   :  { %395 = vsyncpa [#allocation7], 1 }
 0x209   :  { %396 = vsyncpa [#allocation5], 1 }

</bundles_post_ra>
